<compile_context>
chip_gen: v5e
topology: v5e:2x2
jax: 0.10.0
libtpu: 0.0.40
codegen_flags: <defaults>
</compile_context>

<pallas_src>
import functools

import jax
import jax.numpy as jnp
from jax.experimental import pallas as pl
from jax.experimental.pallas import tpu as pltpu


def _root_else_kernel(x0_ref, x1_ref, w_ref, b_ref, o_ref, *,
                      B, C0, C1, Cout, K, L, pad, residual):
    """Fused Conv1d(no bias) + BatchNorm1d(eval, folded) + residual + ReLU.

    x0_ref : [B*C0, L]       children[0], rows = b*C0 + c
    x1_ref : [B*C1, L]       children[1], rows = b*C1 + c
    w_ref  : [Cout, Cin*K]   BN-scale-folded conv weights, col = k*Cin + c
    b_ref  : [Cout, 1]       folded BN bias
    o_ref  : [B*Cout, L]     output, rows = b*Cout + o
    """
    Cin = C0 + C1

    # Hoisted lane index + conv edge masks: one iota and (K-1) compares for the whole kernel.
    lane = jax.lax.broadcasted_iota(jnp.int32, (Cin, L), 1)
    zero_mask = {}
    for k in range(K):
        s = pad - k
        if s > 0:
            zero_mask[s] = lane < s            # zero left edge
        elif s < 0:
            zero_mask[s] = lane >= L + s       # zero right edge

    def tap(block, k):
        """Shift [Cin, L] block along L by (pad - k) with zero edges ('same' conv padding)."""
        s = pad - k
        if s == 0:
            return block
        rolled = pltpu.roll(block, s % L, axis=1)          # circular roll on the XLU
        return jnp.where(zero_mask[s], 0.0, rolled)

    # Build the im2col slab as a register value (no VMEM scratch): row (k*Cin + c),
    # lane (b*L + l). Each per-batch roll acts on one resident L block, so no cross-batch leak.
    x0_parts = []
    cols = []
    for b in range(B):
        x0b = x0_ref[b * C0:(b + 1) * C0, :].astype(jnp.float32)
        x1b = x1_ref[b * C1:(b + 1) * C1, :].astype(jnp.float32)
        x0_parts.append(x0b)                               # reused by the residual add
        xb = jnp.concatenate([x0b, x1b], axis=0)           # [Cin, L]
        cols.append(jnp.concatenate([tap(xb, k) for k in range(K)], axis=0))  # [K*Cin, L]
    slab = jnp.concatenate(cols, axis=1)                   # [K*Cin, B*L]

    # conv_ + BN scale as one lane-dense matmul: [Cout, K*Cin] x [K*Cin, B*L].
    acc = jnp.dot(w_ref[...], slab, preferred_element_type=jnp.float32)   # [Cout, B*L]

    # BN bias: single broadcast add over the whole accumulator (epilogue VPU slack).
    acc = acc + jnp.broadcast_to(b_ref[...].astype(jnp.float32), (Cout, B * L))

    # Epilogue in f32 (v5e-safe): residual + ReLU, then ONE unmasked (B*Cout, L) store.
    rows = []
    for b in range(B):
        y = acc[:, b * L:(b + 1) * L]                      # [Cout, L]
        if residual:
            y = y + x0_parts[b]                            # children[0] (C0 == Cout)
        rows.append(y)
    out = jnp.maximum(jnp.concatenate(rows, axis=0), 0.0)  # [B*Cout, L]
    o_ref[...] = out.astype(o_ref.dtype)


def fold_bn_into_conv(conv_w, bn_gamma, bn_beta, bn_mean, bn_var, eps=1e-5):
    """One-time (model-load) fold of eval-mode BatchNorm into the conv weights.

    Returns
      w2d  : [Cout, K*Cin] f32, col = k*Cin + c, scaled by gamma/sqrt(var+eps)
      bias : [Cout, 1]     f32, beta - mean*scale
    """
    Cout, Cin, K = conv_w.shape
    scale = (bn_gamma / jnp.sqrt(bn_var + eps)).astype(jnp.float32)
    bias = (bn_beta - bn_mean * scale).astype(jnp.float32)
    w = conv_w.astype(jnp.float32) * scale[:, None, None]              # [Cout, Cin, K]
    w2d = jnp.transpose(w, (0, 2, 1)).reshape(Cout, K * Cin)           # col = k*Cin + c
    return w2d, bias.reshape(Cout, 1)


def root_forward(children, w2d, bias, residual=True):
    """JAX wrapper reproducing Root.forward (non-MHA branch) for two children."""
    assert len(children) == 2, "non-MHA branch exercised here uses 2 children"
    c0, c1 = children
    B, C0, L = c0.shape
    _, C1, _ = c1.shape
    Cin = C0 + C1
    Cout, KC = w2d.shape
    assert KC % Cin == 0
    K = KC // Cin
    assert K % 2 == 1, "padding=(K-1)//2 gives 'same' length only for odd K"
    if residual:
        assert C0 == Cout, "residual add requires children[0] channels == out_channels"
    assert Cin % 8 == 0, "slab rows (k*Cin) should land on sublane-tile boundaries"
    pad = (K - 1) // 2

    # Free (contiguous) reshapes only — no concat / pad / transpose HBM round trips.
    x0 = c0.reshape(B * C0, L)
    x1 = c1.reshape(B * C1, L)

    kernel = functools.partial(_root_else_kernel, B=B, C0=C0, C1=C1, Cout=Cout,
                               K=K, L=L, pad=pad, residual=residual)
    vmem = pl.BlockSpec(memory_space=pltpu.MemorySpace.VMEM)
    out = pl.pallas_call(
        kernel,
        out_shape=jax.ShapeDtypeStruct((B * Cout, L), c0.dtype),
        in_specs=[vmem, vmem, vmem, vmem],
        out_specs=vmem,
    )(x0, x1, w2d, bias)
    return out.reshape(B, Cout, L)


def _reference(children, conv_w, bn_gamma, bn_beta, bn_mean, bn_var,
               residual=True, eps=1e-5):
    """Pure-JAX reference of the same branch for correctness checking."""
    x = jnp.concatenate(children, axis=1)
    Cout, _, K = conv_w.shape
    pad = (K - 1) // 2
    y = jax.lax.conv_general_dilated(
        x, conv_w, window_strides=(1,), padding=[(pad, pad)],
        dimension_numbers=("NCH", "OIH", "NCH"))
    scale = (bn_gamma / jnp.sqrt(bn_var + eps)).reshape(1, Cout, 1)
    bias = (bn_beta - bn_mean * bn_gamma / jnp.sqrt(bn_var + eps)).reshape(1, Cout, 1)
    y = y * scale + bias
    if residual:
        y = y + children[0]
    return jnp.maximum(y, 0.0)


if __name__ == "__main__":
    # Module config implied by the forward pass:
    #   two children of 4 channels each -> in_channels = 8
    #   out_channels must equal children[0] channels (residual add) -> 4
    #   kernel_size = 3, residual = True
    B, C_child, L = 2, 4, 128
    in_channels, out_channels, K = 2 * C_child, C_child, 3

    key = jax.random.PRNGKey(0)
    k0, k1, k2, k3, k4, k5, k6 = jax.random.split(key, 7)

    child0 = jax.random.normal(k0, (B, C_child, L), jnp.float32)
    child1 = jax.random.normal(k1, (B, C_child, L), jnp.float32)

    # Deterministic synthetic parameters (shapes match nn.Conv1d / nn.BatchNorm1d).
    conv_w = 0.1 * jax.random.normal(k2, (out_channels, in_channels, K), jnp.float32)
    bn_gamma = 1.0 + 0.1 * jax.random.normal(k3, (out_channels,), jnp.float32)
    bn_beta = 0.1 * jax.random.normal(k4, (out_channels,), jnp.float32)
    bn_mean = 0.1 * jax.random.normal(k5, (out_channels,), jnp.float32)
    bn_var = 0.5 + jnp.abs(jax.random.normal(k6, (out_channels,), jnp.float32))

    # One-time BN fold (model-load path), out of the steady-state call.
    w2d, bias = fold_bn_into_conv(conv_w, bn_gamma, bn_beta, bn_mean, bn_var)
    w2d = jax.block_until_ready(w2d)

    fwd = jax.jit(functools.partial(root_forward, residual=True))
    out = fwd((child0, child1), w2d, bias)
    out = jax.block_until_ready(out)

    ref = _reference((child0, child1), conv_w, bn_gamma, bn_beta, bn_mean, bn_var,
                     residual=True)
    assert out.shape == (B, out_channels, L)
    assert jnp.allclose(out, ref, atol=1e-4, rtol=1e-4), "mismatch vs reference"

    print("KERNEL_OK")
</pallas_src>

<mosaic_0001>
module attributes {stable_mosaic.version = 11 : i64} {
  func.func @_root_else_kernel(%arg0: memref<8x128xf32, #tpu.memory_space<vmem>>, %arg1: memref<8x128xf32, #tpu.memory_space<vmem>>, %arg2: memref<4x24xf32, #tpu.memory_space<vmem>>, %arg3: memref<4x1xf32, #tpu.memory_space<vmem>>, %arg4: memref<8x128xf32, #tpu.memory_space<vmem>>) attributes {dimension_semantics = [], scalar_prefetch = 0 : i64, scratch_operands = 0 : i64, tpu.core_type = #tpu.core_type<tc>} {
    %0 = tpu.iota {dimensions = array<i32: 1>} : vector<8x128xi32>
    %c1_i32 = arith.constant 1 : i32
    %1 = vector.broadcast %c1_i32 : i32 to vector<8x128xi32>
    %2 = arith.cmpi slt, %0, %1 : vector<8x128xi32>
    %c127_i32 = arith.constant 127 : i32
    %3 = vector.broadcast %c127_i32 : i32 to vector<8x128xi32>
    %4 = arith.cmpi sge, %0, %3 : vector<8x128xi32>
    %c0 = arith.constant 0 : index
    %c0_0 = arith.constant 0 : index
    %5 = vector.load %arg0[%c0, %c0_0] : memref<8x128xf32, #tpu.memory_space<vmem>>, vector<4x128xf32>
    %c0_1 = arith.constant 0 : index
    %c0_2 = arith.constant 0 : index
    %6 = vector.load %arg1[%c0_1, %c0_2] : memref<8x128xf32, #tpu.memory_space<vmem>>, vector<4x128xf32>
    %7 = tpu.concatenate %5, %6 in 0 : vector<4x128xf32>, vector<4x128xf32> -> vector<8x128xf32>
    %c1_i32_3 = arith.constant 1 : i32
    %8 = tpu.dynamic_rotate %7 by %c1_i32_3 dim 1 : vector<8x128xf32>, i32 -> vector<8x128xf32>
    %cst = arith.constant 0.000000e+00 : f32
    %9 = vector.broadcast %cst : f32 to vector<8x128xf32>
    %10 = arith.select %2, %9, %8 : vector<8x128xi1>, vector<8x128xf32>
    %c127_i32_4 = arith.constant 127 : i32
    %11 = tpu.dynamic_rotate %7 by %c127_i32_4 dim 1 : vector<8x128xf32>, i32 -> vector<8x128xf32>
    %cst_5 = arith.constant 0.000000e+00 : f32
    %12 = vector.broadcast %cst_5 : f32 to vector<8x128xf32>
    %13 = arith.select %4, %12, %11 : vector<8x128xi1>, vector<8x128xf32>
    %14 = tpu.concatenate %10, %7, %13 in 0 : vector<8x128xf32>, vector<8x128xf32>, vector<8x128xf32> -> vector<24x128xf32>
    %c4 = arith.constant 4 : index
    %c0_6 = arith.constant 0 : index
    %15 = vector.load %arg0[%c4, %c0_6] : memref<8x128xf32, #tpu.memory_space<vmem>>, vector<4x128xf32>
    %c4_7 = arith.constant 4 : index
    %c0_8 = arith.constant 0 : index
    %16 = vector.load %arg1[%c4_7, %c0_8] : memref<8x128xf32, #tpu.memory_space<vmem>>, vector<4x128xf32>
    %17 = tpu.concatenate %15, %16 in 0 : vector<4x128xf32>, vector<4x128xf32> -> vector<8x128xf32>
    %c1_i32_9 = arith.constant 1 : i32
    %18 = tpu.dynamic_rotate %17 by %c1_i32_9 dim 1 : vector<8x128xf32>, i32 -> vector<8x128xf32>
    %cst_10 = arith.constant 0.000000e+00 : f32
    %19 = vector.broadcast %cst_10 : f32 to vector<8x128xf32>
    %20 = arith.select %2, %19, %18 : vector<8x128xi1>, vector<8x128xf32>
    %c127_i32_11 = arith.constant 127 : i32
    %21 = tpu.dynamic_rotate %17 by %c127_i32_11 dim 1 : vector<8x128xf32>, i32 -> vector<8x128xf32>
    %cst_12 = arith.constant 0.000000e+00 : f32
    %22 = vector.broadcast %cst_12 : f32 to vector<8x128xf32>
    %23 = arith.select %4, %22, %21 : vector<8x128xi1>, vector<8x128xf32>
    %24 = tpu.concatenate %20, %17, %23 in 0 : vector<8x128xf32>, vector<8x128xf32>, vector<8x128xf32> -> vector<24x128xf32>
    %25 = tpu.concatenate %14, %24 in 1 : vector<24x128xf32>, vector<24x128xf32> -> vector<24x256xf32>
    %c0_13 = arith.constant 0 : index
    %c0_14 = arith.constant 0 : index
    %26 = vector.load %arg2[%c0_13, %c0_14] : memref<4x24xf32, #tpu.memory_space<vmem>>, vector<4x24xf32>
    %cst_15 = arith.constant dense<0.000000e+00> : vector<4x256xf32>
    %27 = tpu.matmul %26, %25, %cst_15 {dimension_numbers = #tpu.dot_dimension_numbers<[1], [0], [0], [1], [0, 0, 1, 1], [], []>} : vector<4x24xf32>, vector<24x256xf32>, vector<4x256xf32> -> vector<4x256xf32>
    %c0_16 = arith.constant 0 : index
    %c0_17 = arith.constant 0 : index
    %28 = vector.load %arg3[%c0_16, %c0_17] : memref<4x1xf32, #tpu.memory_space<vmem>>, vector<4x1xf32>
    %29 = vector.shape_cast %28 : vector<4x1xf32> to vector<4x1xf32>
    %30 = vector.broadcast %29 : vector<4x1xf32> to vector<4x256xf32>
    %31 = arith.addf %27, %30 : vector<4x256xf32>
    %32 = vector.extract_strided_slice %31 {offsets = [0, 0], sizes = [4, 128], strides = [1, 1]} : vector<4x256xf32> to vector<4x128xf32>
    %33 = arith.addf %32, %5 : vector<4x128xf32>
    %34 = vector.extract_strided_slice %31 {offsets = [0, 128], sizes = [4, 128], strides = [1, 1]} : vector<4x256xf32> to vector<4x128xf32>
    %35 = arith.addf %34, %15 : vector<4x128xf32>
    %36 = tpu.concatenate %33, %35 in 0 : vector<4x128xf32>, vector<4x128xf32> -> vector<8x128xf32>
    %cst_18 = arith.constant 0.000000e+00 : f32
    %37 = vector.broadcast %cst_18 : f32 to vector<8x128xf32>
    %38 = arith.maximumf %36, %37 : vector<8x128xf32>
    %c0_19 = arith.constant 0 : index
    %c0_20 = arith.constant 0 : index
    %39 = vector.load %arg4[%c0_19, %c0_20] : memref<8x128xf32, #tpu.memory_space<vmem>>, vector<8x128xf32>
    tpu.vector_store %arg4[%c0_19, %c0_20], %38 {strides = array<i32>} : memref<8x128xf32, #tpu.memory_space<vmem>>, vector<8x128xf32>,
    return
  }
}

</mosaic_0001>

<bundles_post_ra>
// kernel: root_forward.1
= control target key start
LH: loop header
LB: loop body
LE: loop exit
PB: predicated region body
PF: predicated region fallthrough
CT: control target
= control target key end

     0   :  { %9 = vsyncpa [#allocation3], 0  ;;  %s299_s0 = inlined_call_operand.hbm [shape: f32[8,128], index: 0, kind: input, shape index: {}]   ;;  %s300_s1 = inlined_call_operand.hbm [shape: f32[8,128], index: 1, kind: input, shape index: {}]   ;;  %s301_s2 = inlined_call_operand.vmem [shape: f32[4,24], index: 2, kind: input, shape index: {}]   ;;  %s302_s3 = inlined_call_operand.vmem [shape: f32[4,1], index: 3, kind: input, shape index: {}]   ;;  %s303_s4 = inlined_call_operand.hbm [shape: f32[8,128], index: 4, kind: output, shape index: {}]  }
   0x1   :  { %10 = vsyncpa [#allocation6], 0 }
   0x2   :  { %11 = vsyncpa [#allocation4], 0  ;;  %s17_s17 = sshll.u32 %s299_s0, 4  ;;  %s250_s18 = smov [#allocation2]   ;;  %s18_s17 = int_to_ptr.hbm [resolvable:$true] %s17_s17 }
   0x3   :  { %s19_s19 = sshll.u32 %s250_s18, 4  ;;  %s28_s22 = sshll.u32 %s300_s1, 4  ;;  %s20_s19 = int_to_ptr.vmem [resolvable:$true] %s19_s19  ;;  %s29_s22 = int_to_ptr.hbm [resolvable:$true] %s28_s22 }
   0x4   :  { %22 = dma.hbm_to_vmem [thread:$0]  %s18_s17, 128, %s20_s19, [#allocation3]  }
   0x5   :  { %s251_s23 = smov [#allocation5]  }
   0x6   :  { %s30_s24 = sshll.u32 %s251_s23, 4  ;;  %s31_s24 = int_to_ptr.vmem [resolvable:$true] %s30_s24 }
   0x7   :  { %33 = dma.hbm_to_vmem [thread:$0]  %s29_s22, 128, %s31_s24, [#allocation6]  }
   0x8   :  { %244 = dma.done.wait [#allocation3], 128  }
   0x9   :  { %245 = vsyncadd [#allocation3], 4294967168 }
   0xa   :  { %246 = dma.done.wait [#allocation6], 128  }
   0xb   :  { %247 = vsyncadd [#allocation6], 4294967168  ;;  %vm55_vm0 = vcmask 1043456   ;;  %v63_v0 = vld [vmem:[#allocation2 + $0x4] sm:$0xf]  ;;  %s252_s0 = smov 127   ;;  %v46_v10 = vlaneseq }
   0xc   :  { %v64_v1 = vld [vmem:[#allocation5 + $0x4] sm:$0xf]  ;;  %v51_v3 = vld [vmem:[#allocation5] sm:$0xf]  ;;  %s253_s1 = smov 1   ;;  %v254_v9 = vmov 0  }
   0xd   :  { %v66_v2 = vrot.slane %v64_v1, 4  ;;  %v53_v5 = vrot.slane %v51_v3, 4  ;;  %v50_v6 = vld [vmem:[#allocation2] sm:$0xf]  ;;  %170 = vset.pattern.permute.xlu2 %v254_v9  ;;  %171 = vset.pattern.permute.xlu0 %v254_v9  ;;  %v47_v11 = vand.u32 127, %v46_v10  ;;  %vm82_vm3 = vcmask 195584  }
   0xe   :  { %v76_v8 = vld [vmem:[%s302_s3] sm:$0xf]  ;;  %s255_s3 = smov [#allocation7]   ;;  %s141_s5 = sshll.u32 %s303_s4, 4  ;;  %s142_s5 = int_to_ptr.hbm [resolvable:$true] %s141_s5 }
   0xf   :  { %v68_v4 = vsel %vm55_vm0, %v63_v0, %v66_v2  ;;  %v56_v7 = vsel %vm55_vm0, %v50_v6, %v53_v5  ;;  %79 = vperm.xlu2 %170, %v76_v8   ;;  %vm162_vm1 = vcmp.lt.s32.totalorder %v47_v11, 127  ;;  %vm163_vm2 = vcmp.ge.s32.totalorder %v47_v11, 1  ;;  %v75_v14 = vld [vmem:[%s301_s2] sm:$0xf]  ;;  %s139_s29 = sshll.u32 %s255_s3, 4  ;;  %s140_s29 = int_to_ptr.vmem [resolvable:$true] %s139_s29 }
  0x10   :  { %72 = vrot.lane.b32.xlu0 %v68_v4, %s252_s0  ;;  %69 = vrot.lane.b32.xlu1 %v68_v4, %s253_s1 }
  0x18   :  { %60 = vrot.lane.b32.xlu0 %v56_v7, %s252_s0  ;;  %57 = vrot.lane.b32.xlu1 %v56_v7, %s253_s1 }
  0x69   :  { %v80_v17 = vpop.permute.xlu2 %79 }
  0x82   :  { %v73_v12 = vpop.permute.xlu0 %72  ;;  %v70_v13 = vpop.permute.xlu1 %69 }
  0x83   :  { %158 = vmatpush.msk.msra.mxu1 %vm162_vm1, %v73_v12 }
  0x85   :  { %120 = vmatpush.msra.mxu1 %v68_v4 }
  0x87   :  { %160 = vmatpush.msk.msra.mxu1 %vm163_vm2, %v70_v13 }
  0x88   :  { %161 = vmatmul.msk.f32.vlgmr.msra.gmra.mxu1 %vm82_vm3, %v75_v14 }
  0x8a   :  { %v61_v15 = vpop.permute.xlu0 %60  ;;  %v58_v16 = vpop.permute.xlu1 %57 }
  0x8b   :  { %153 = vmatpush.msk.msra.mxu0 %vm162_vm1, %v61_v15 }
  0x8d   :  { %100 = vmatpush.msra.mxu0 %v56_v7 }
  0x8f   :  { %155 = vmatpush.msk.msra.mxu0 %vm163_vm2, %v58_v16 }
  0x90   :  { %156 = vmatmul.msk.f32.vlgmr.msra.gmra.mxu0 %vm82_vm3, %v75_v14 }
 0x105   :  { %v123_v18 = vpop.f32.mrf.mxu1 }
 0x106   :  { %v124_v19 = vadd.f32 %v123_v18, %v80_v17 }
 0x108   :  { %v127_v20 = vadd.f32 %v124_v19, %v63_v0 }
 0x10a   :  { %v129_v22 = vrot.slane %v127_v20, 4 }
 0x10d   :  { %v103_v21 = vpop.f32.mrf.mxu0 }
 0x10e   :  { %v104_v23 = vadd.f32 %v103_v21, %v80_v17 }
 0x110   :  { %v126_v24 = vadd.f32 %v104_v23, %v50_v6 }
 0x112   :  { %v131_v25 = vsel %vm55_vm0, %v126_v24, %v129_v22 }
 0x113   :  { %v132_v26 = vmax.f32 %v131_v25, 0.0 }
 0x115   :  { %133 = vst [vmem:[#allocation7] sm:$0xff] %v132_v26 }
 0x116   :  { %144 = dma.vmem_to_hbm [thread:$0]  %s140_s29, 128, %s142_s5, [#allocation4]  }
 0x117   :  { %248 = dma.done.wait [#allocation4], 128  }
 0x118   :  { %249 = vsyncadd [#allocation4], 4294967168 }
 0x119   :  { %149 = vsyncpa [#allocation3], 1 }
 0x11a   :  { %150 = vsyncpa [#allocation6], 1 }
 0x11b   :  { %151 = vsyncpa [#allocation4], 1 }

</bundles_post_ra>
